<compile_context>
chip_gen: v6e
topology: v6e:2x2x1
jax: 0.10.0
libtpu: 0.0.40
codegen_flags: <defaults>
</compile_context>

<pallas_src>
import functools

import jax
import jax.numpy as jnp
from jax.experimental import pallas as pl
from jax.experimental.pallas import tpu as pltpu

_LANES = 128


# --------------------------------------------------------------------------- #
# Kernels
# --------------------------------------------------------------------------- #
def _binacc_reduce_kernel(yp_ref, yt_ref, o_ref, acc_ref, *,
                          threshold, tm, k_steps, rows, needs_mask):
    """Grid = (groups 'parallel', k_steps 'arbitrary').  Per-group partial sums."""
    g = pl.program_id(0)
    k = pl.program_id(1)

    @pl.when(k == 0)
    def _():
        acc_ref[...] = jnp.zeros_like(acc_ref)

    # Exact torch semantics: (y_pred > thr).float() == y_true.float()
    pred = (yp_ref[...] > threshold).astype(jnp.float32)
    match = (pred == yt_ref[...].astype(jnp.float32)).astype(jnp.float32)

    if needs_mask:
        # Last / overflow blocks may cover rows past the valid slab; zero them.
        block_idx = g * k_steps + k
        row0 = block_idx * tm
        row_ids = row0 + jax.lax.broadcasted_iota(jnp.int32, (tm, _LANES), 0)
        match = jnp.where(row_ids < rows, match, 0.0)

    # Per-element partial sums: pure VPU vreg adds every step, no XLU.
    acc_ref[...] += match

    @pl.when(k == k_steps - 1)
    def _():
        # Single cross-sublane reduce per group in the epilogue.
        o_ref[0] = jnp.sum(acc_ref[...], axis=0, keepdims=True)


def _binacc_none_kernel(yp_ref, yt_ref, o_ref, *, threshold):
    """reduction='none': per-element 100 * (pred_bin == true)."""
    pred = (yp_ref[...] > threshold).astype(jnp.float32)
    o_ref[...] = jnp.where(pred == yt_ref[...].astype(jnp.float32), 100.0, 0.0)


# --------------------------------------------------------------------------- #
# Wrapper
# --------------------------------------------------------------------------- #
def _as_lane_slab(y_pred, y_true):
    """Flatten (metadata-only) and view as a lane-dense (rows, 128) slab.

    Only when total % 128 != 0 do we pad the flat arrays (rare).  y_true is
    padded with 2, which can never equal a 0/1 binary prediction, so padded
    positions contribute 0 matches; y_pred is padded with zeros.
    """
    total = int(y_pred.size)
    yp = y_pred.reshape(-1)
    yt = y_true.reshape(-1)
    if yp.dtype == jnp.bool_:
        yp = yp.astype(jnp.float32)
    if yt.dtype == jnp.bool_:
        yt = yt.astype(jnp.float32)

    pad = (-total) % _LANES
    if pad:
        # TODO(synk): the <128-element ragged tail could be masked in-kernel to
        # avoid this (rare) pad copy entirely.
        yp = jnp.pad(yp, (0, pad))
        yt = jnp.pad(yt, (0, pad), constant_values=2)
    rows = (total + pad) // _LANES
    return yp.reshape(rows, _LANES), yt.reshape(rows, _LANES), total, rows


def _pick_tm(rows, tm, *, default):
    tm = default if tm is None else int(tm)
    if tm >= rows:
        return rows                      # full-extent block (always legal)
    return max(8, (tm // 8) * 8)         # sublane-aligned tile


def _nbytes(a):
    return int(a.size) * a.dtype.itemsize


def binary_accuracy(y_pred, y_true, *, threshold=0.0, reduction="mean", tm=None):
    """Pallas-TPU implementation of poutyne.BinaryAccuracy.forward."""
    if reduction not in ("none", "mean", "sum"):
        raise ValueError("Reduction is not in ['none', 'mean', 'sum']")

    orig_shape = y_pred.shape
    yp2d, yt2d, total, rows = _as_lane_slab(y_pred, y_true)

    if reduction == "none":
        tm_eff = _pick_tm(rows, tm, default=2048)        # ~1 MiB f32 tiles
        n_blocks = pl.cdiv(rows, tm_eff)
        out2d = pl.pallas_call(
            functools.partial(_binacc_none_kernel, threshold=threshold),
            out_shape=jax.ShapeDtypeStruct((rows, _LANES), jnp.float32),
            grid_spec=pltpu.PrefetchScalarGridSpec(
                num_scalar_prefetch=0,
                grid=(n_blocks,),
                in_specs=[pl.BlockSpec((tm_eff, _LANES), lambda i: (i, 0)),
                          pl.BlockSpec((tm_eff, _LANES), lambda i: (i, 0))],
                out_specs=pl.BlockSpec((tm_eff, _LANES), lambda i: (i, 0)),
            ),
            compiler_params=pltpu.CompilerParams(
                dimension_semantics=("parallel",)),
            cost_estimate=pl.CostEstimate(
                flops=4 * total, transcendentals=0,
                bytes_accessed=_nbytes(yp2d) + _nbytes(yt2d) + rows * _LANES * 4),
        )(yp2d, yt2d)
        flat = out2d.reshape(-1)
        if flat.size != total:            # only when the rare pad path ran
            flat = flat[:total]
        return flat.reshape(orig_shape)

    # ----- reduction in ('mean', 'sum') ------------------------------------ #
    tm_eff = _pick_tm(rows, tm, default=4096)            # ~2 MiB f32 tiles
    n_blocks = pl.cdiv(rows, tm_eff)
    n_groups = min(2, n_blocks)      # leading 'parallel' axis: 2 TCs on v7x
    k_steps = pl.cdiv(n_blocks, n_groups)
    needs_mask = (rows % tm_eff != 0) or (n_groups * k_steps != n_blocks)

    def in_map(g, k):
        # Clamp so the last group's overflow steps stay in bounds; the
        # in-kernel row mask zeroes their contribution.
        return (jnp.minimum(g * k_steps + k, n_blocks - 1), 0)

    partials = pl.pallas_call(
        functools.partial(_binacc_reduce_kernel, threshold=threshold,
                          tm=tm_eff, k_steps=k_steps, rows=rows,
                          needs_mask=needs_mask),
        out_shape=jax.ShapeDtypeStruct((n_groups, 1, _LANES), jnp.float32),
        grid_spec=pltpu.PrefetchScalarGridSpec(
            num_scalar_prefetch=0,
            grid=(n_groups, k_steps),
            in_specs=[pl.BlockSpec((tm_eff, _LANES), in_map),
                      pl.BlockSpec((tm_eff, _LANES), in_map)],
            out_specs=pl.BlockSpec((1, 1, _LANES), lambda g, k: (g, 0, 0)),
            scratch_shapes=[pltpu.VMEM((tm_eff, _LANES), jnp.float32)],
        ),
        compiler_params=pltpu.CompilerParams(
            dimension_semantics=("parallel", "arbitrary")),
        cost_estimate=pl.CostEstimate(
            flops=5 * total, transcendentals=0,
            bytes_accessed=_nbytes(yp2d) + _nbytes(yt2d)),
    )(yp2d, yt2d)

    divisor = float(total) if reduction == "mean" else 1.0
    # Tiny final cross-lane / cross-group reduction (<= 2*128 floats).
    return (jnp.sum(partials) / divisor) * 100.0


# --------------------------------------------------------------------------- #
# Reference + self-test
# --------------------------------------------------------------------------- #
def _reference(y_pred, y_true, *, threshold=0.0, reduction="mean"):
    pred = (y_pred > threshold).astype(jnp.float32)
    acc = (pred == y_true.astype(jnp.float32)).astype(jnp.float32)
    if reduction == "mean":
        acc = acc.mean()
    elif reduction == "sum":
        acc = acc.sum()
    return acc * 100.0


if __name__ == "__main__":
    key = jax.random.PRNGKey(0)
    k1, k2, k3, k4 = jax.random.split(key, 4)

    # Primary case: (N, *) logits + binary targets, total % 128 == 0.
    shape = (2, 4, 16, 16)
    y_pred = jax.random.normal(k1, shape, dtype=jnp.float32)
    y_true = (jax.random.uniform(k2, shape) > 0.5).astype(jnp.float32)

    out_mean = jax.block_until_ready(
        binary_accuracy(y_pred, y_true, threshold=0.0, reduction="mean"))
    out_sum = jax.block_until_ready(
        binary_accuracy(y_pred, y_true, threshold=0.0, reduction="sum"))
    out_none = jax.block_until_ready(
        binary_accuracy(y_pred, y_true, threshold=0.0, reduction="none"))

    assert jnp.allclose(out_mean, _reference(y_pred, y_true, reduction="mean"),
                        rtol=1e-5, atol=1e-4), ("mean", out_mean)
    assert jnp.allclose(out_sum, _reference(y_pred, y_true, reduction="sum"),
                        rtol=1e-5, atol=1e-2), ("sum", out_sum)
    assert out_none.shape == shape
    assert jnp.allclose(out_none, _reference(y_pred, y_true, reduction="none"))

    # Ragged rows (rows % tm != 0) + multi-group reduce path.
    shape2 = (20, 128)
    yp2 = jax.random.normal(k3, shape2, dtype=jnp.float32)
    yt2 = (jax.random.uniform(k4, shape2) > 0.5).astype(jnp.float32)
    out2m = jax.block_until_ready(
        binary_accuracy(yp2, yt2, reduction="mean", tm=8))
    out2n = jax.block_until_ready(
        binary_accuracy(yp2, yt2, reduction="none", tm=8))
    assert jnp.allclose(out2m, _reference(yp2, yt2, reduction="mean"),
                        rtol=1e-5, atol=1e-4), ("ragged mean", out2m)
    assert out2n.shape == shape2
    assert jnp.allclose(out2n, _reference(yp2, yt2, reduction="none"))

    # total not a multiple of 128 (pad fallback path).
    shape3 = (3, 5, 7)
    yp3 = jax.random.normal(k1, shape3, dtype=jnp.float32)
    yt3 = (jax.random.uniform(k2, shape3) > 0.5).astype(jnp.float32)
    out3m = jax.block_until_ready(binary_accuracy(yp3, yt3, reduction="mean"))
    out3n = jax.block_until_ready(binary_accuracy(yp3, yt3, reduction="none"))
    assert jnp.allclose(out3m, _reference(yp3, yt3, reduction="mean"),
                        rtol=1e-5, atol=1e-4), ("pad mean", out3m)
    assert out3n.shape == shape3
    assert jnp.allclose(out3n, _reference(yp3, yt3, reduction="none"))

    print("KERNEL_OK")
</pallas_src>

<mosaic_0001>
module attributes {stable_mosaic.version = 11 : i64} {
  func.func @_binacc_reduce_kernel(%arg0: i32, %arg1: i32, %arg2: memref<16x128xf32, #tpu.memory_space<vmem>>, %arg3: memref<16x128xf32, #tpu.memory_space<vmem>>, %arg4: memref<1x1x128xf32, #tpu.memory_space<vmem>>, %arg5: memref<16x128xf32, #tpu.memory_space<vmem>>) attributes {dimension_semantics = [#tpu.dimension_semantics<parallel>, #tpu.dimension_semantics<arbitrary>], iteration_bounds = array<i64: 1, 1>, scalar_prefetch = 0 : i64, scratch_operands = 1 : i64, tpu.core_type = #tpu.core_type<tc>, window_params = [{transform_indices = @transform_0, window_bounds = array<i64: 16, 128>}, {transform_indices = @transform_1, window_bounds = array<i64: 16, 128>}, {transform_indices = @transform_2, window_bounds = array<i64: 1, 1, 128>}]} {
    %c0_i32 = arith.constant 0 : i32
    %0 = arith.cmpi eq, %arg1, %c0_i32 : i32
    %1 = arith.extui %0 : i1 to i32
    %c0_i32_0 = arith.constant 0 : i32
    %2 = arith.cmpi ne, %1, %c0_i32_0 : i32
    scf.if %2 {
      %cst_10 = arith.constant 0.000000e+00 : f32
      %18 = vector.broadcast %cst_10 : f32 to vector<16x128xf32>
      %c0_11 = arith.constant 0 : index
      %c0_12 = arith.constant 0 : index
      %19 = vector.load %arg5[%c0_11, %c0_12] : memref<16x128xf32, #tpu.memory_space<vmem>>, vector<16x128xf32>
      tpu.vector_store %arg5[%c0_11, %c0_12], %18 {strides = array<i32>} : memref<16x128xf32, #tpu.memory_space<vmem>>, vector<16x128xf32>,
    } else {
    }
    %c0 = arith.constant 0 : index
    %c0_1 = arith.constant 0 : index
    %3 = vector.load %arg2[%c0, %c0_1] : memref<16x128xf32, #tpu.memory_space<vmem>>, vector<16x128xf32>
    %cst = arith.constant 0.000000e+00 : f32
    %4 = vector.broadcast %cst : f32 to vector<16x128xf32>
    %5 = arith.cmpf ogt, %3, %4 : vector<16x128xf32>
    %6 = arith.extui %5 : vector<16x128xi1> to vector<16x128xi32>
    %7 = arith.sitofp %6 : vector<16x128xi32> to vector<16x128xf32>
    %c0_2 = arith.constant 0 : index
    %c0_3 = arith.constant 0 : index
    %8 = vector.load %arg3[%c0_2, %c0_3] : memref<16x128xf32, #tpu.memory_space<vmem>>, vector<16x128xf32>
    %9 = arith.cmpf oeq, %7, %8 : vector<16x128xf32>
    %10 = arith.extui %9 : vector<16x128xi1> to vector<16x128xi32>
    %11 = arith.sitofp %10 : vector<16x128xi32> to vector<16x128xf32>
    %c0_4 = arith.constant 0 : index
    %c0_5 = arith.constant 0 : index
    %12 = vector.load %arg5[%c0_4, %c0_5] : memref<16x128xf32, #tpu.memory_space<vmem>>, vector<16x128xf32>
    %13 = arith.addf %12, %11 : vector<16x128xf32>
    %c0_6 = arith.constant 0 : index
    %c0_7 = arith.constant 0 : index
    %14 = vector.load %arg5[%c0_6, %c0_7] : memref<16x128xf32, #tpu.memory_space<vmem>>, vector<16x128xf32>
    tpu.vector_store %arg5[%c0_6, %c0_7], %13 {strides = array<i32>} : memref<16x128xf32, #tpu.memory_space<vmem>>, vector<16x128xf32>,
    %c0_i32_8 = arith.constant 0 : i32
    %15 = arith.cmpi eq, %arg1, %c0_i32_8 : i32
    %16 = arith.extui %15 : i1 to i32
    %c0_i32_9 = arith.constant 0 : i32
    %17 = arith.cmpi ne, %16, %c0_i32_9 : i32
    scf.if %17 {
      %c0_10 = arith.constant 0 : index
      %c0_11 = arith.constant 0 : index
      %18 = vector.load %arg5[%c0_10, %c0_11] : memref<16x128xf32, #tpu.memory_space<vmem>>, vector<16x128xf32>
      %cst_12 = arith.constant dense<0.000000e+00> : vector<128xf32>
      %19 = vector.multi_reduction <add>, %18, %cst_12 [0] : vector<16x128xf32> to vector<128xf32>
      %20 = vector.shape_cast %19 : vector<128xf32> to vector<1x128xf32>
      %c0_13 = arith.constant 0 : index
      %c0_14 = arith.constant 0 : index
      %c0_15 = arith.constant 0 : index
      %21 = vector.load %arg4[%c0_13, %c0_14, %c0_15] : memref<1x1x128xf32, #tpu.memory_space<vmem>>, vector<1x1x128xf32>
      %22 = vector.shape_cast %21 : vector<1x1x128xf32> to vector<1x128xf32>
      %23 = vector.shape_cast %20 : vector<1x128xf32> to vector<1x1x128xf32>
      tpu.vector_store %arg4[%c0_13, %c0_14, %c0_15], %23 {strides = array<i32>} : memref<1x1x128xf32, #tpu.memory_space<vmem>>, vector<1x1x128xf32>,
    } else {
    }
    return
  }
  func.func @transform_0(%arg0: i32, %arg1: i32) -> (i32, i32) {
    %c1_i32 = arith.constant 1 : i32
    %0 = arith.muli %arg0, %c1_i32 : i32
    %1 = arith.addi %0, %arg1 : i32
    %c0_i32 = arith.constant 0 : i32
    %2 = arith.minsi %1, %c0_i32 : i32
    %c0_i32_0 = arith.constant 0 : i32
    %c0_i32_1 = arith.constant 0 : i32
    return %2, %c0_i32_0 : i32, i32
  }
  func.func @transform_1(%arg0: i32, %arg1: i32) -> (i32, i32) {
    %c1_i32 = arith.constant 1 : i32
    %0 = arith.muli %arg0, %c1_i32 : i32
    %1 = arith.addi %0, %arg1 : i32
    %c0_i32 = arith.constant 0 : i32
    %2 = arith.minsi %1, %c0_i32 : i32
    %c0_i32_0 = arith.constant 0 : i32
    %c0_i32_1 = arith.constant 0 : i32
    return %2, %c0_i32_0 : i32, i32
  }
  func.func @transform_2(%arg0: i32, %arg1: i32) -> (i32, i32, i32) {
    %c0_i32 = arith.constant 0 : i32
    %c0_i32_0 = arith.constant 0 : i32
    %c0_i32_1 = arith.constant 0 : i32
    return %arg0, %c0_i32, %c0_i32_0 : i32, i32, i32
  }
}

</mosaic_0001>

<bundles_post_ra>
// kernel: tpu_custom_call.1
= control target key start
LH: loop header
LB: loop body
LE: loop exit
PB: predicated region body
PF: predicated region fallthrough
CT: control target
= control target key end

     0   :  { %7 = vsyncpa [#allocation4], 0  ;;  %s227_s0 = inlined_call_operand.hbm [shape: f32[16,128], index: 0, kind: input, shape index: {}]   ;;  %s228_s1 = inlined_call_operand.hbm [shape: f32[16,128], index: 1, kind: input, shape index: {}]   ;;  %s229_s2 = inlined_call_operand.hbm [shape: f32[1,1,128], index: 2, kind: output, shape index: {}]  }
   0x1   :  { %8 = vsyncpa [#allocation7], 0 }
   0x2   :  { %9 = vsyncpa [#allocation5], 0  ;;  %s197_s9 = smov [#allocation3]  }
   0x3   :  { %s21_s10 = sshll.u32 %s197_s9, 4  ;;  %s22_s10 = int_to_ptr.vmem [resolvable:$true] %s21_s10 }
   0x4   :  { %s139_s11 = scalar_lea.vmem %s22_s10, 256  ;;  %p144_p1 = scmp.lt.s32.totalorder %s22_s10, %s22_s10 }
   0x5   :  { %p140_p0 = scmp.ne.s32.totalorder %s22_s10, %s139_s11  ;;  %p145_p2 = scmp.lt.s32.totalorder %s139_s11, %s139_s11 }
   0x7   :  { %p146_p3 = por %p145_p2, %p144_p1 }
   0x9   :  { %p147_p4 = pnand %p146_p3, %p140_p0 }
   0xb   :  { %150 = shalt.err (!%p147_p4)
}
   0xc   :  { %s198_s12 = smov 128   ;;  %s199_s13 = smov 8  }
   0xd   :  { %27 = dma.hbm_to_vmem [thread:$0]  %s227_s0, 256, %s22_s10, [#allocation4], %s198_s12, %s198_s12, %s199_s13  }
   0xe   :  { %s200_s16 = smov [#allocation6]  }
   0xf   :  { %s39_s17 = sshll.u32 %s200_s16, 4  ;;  %s40_s17 = int_to_ptr.vmem [resolvable:$true] %s39_s17 }
  0x10   :  { %s159_s18 = scalar_lea.vmem %s40_s17, 256  ;;  %p164_p6 = scmp.lt.s32.totalorder %s40_s17, %s40_s17 }
  0x11   :  { %p160_p5 = scmp.ne.s32.totalorder %s40_s17, %s159_s18  ;;  %p165_p7 = scmp.lt.s32.totalorder %s159_s18, %s159_s18 }
  0x13   :  { %p166_p8 = por %p165_p7, %p164_p6 }
  0x15   :  { %p167_p9 = pnand %p166_p8, %p160_p5 }
  0x17   :  { %170 = shalt.err (!%p167_p9)
}
  0x18   :  { %45 = dma.hbm_to_vmem [thread:$0]  %s228_s1, 256, %s40_s17, [#allocation7], %s198_s12, %s198_s12, %s199_s13  }
  0x19   :  { %191 = dma.done.wait [#allocation4], 256  }
  0x1a   :  { %192 = vsyncadd [#allocation4], 4294967040 }
  0x1b   :  { %193 = dma.done.wait [#allocation7], 256  }
  0x1c   :  { %194 = vsyncadd [#allocation7], 4294967040  ;;  %v66_v0 = vld [vmem:[#allocation3] sm:$0xff]  ;;  %v67_v1 = vld [vmem:[#allocation3 + $0x8] sm:$0xff]  ;;  %v201_v4 = vmov 0.0   ;;  %s202_s0 = smov [#allocation8]  }
  0x1d   :  { %v74_v2 = vld [vmem:[#allocation6] sm:$0xff]  ;;  %vm68_vm0 = vcmp.gt.f32.partialorder %v66_v0, 0.0  ;;  %vm69_vm1 = vcmp.gt.f32.partialorder %v67_v1, 0.0  ;;  %v75_v3 = vld [vmem:[#allocation6 + $0x8] sm:$0xff]  ;;  %s107_s1 = sshll.u32 %s202_s0, 4  ;;  %s108_s1 = int_to_ptr.vmem [resolvable:$true] %s107_s1 }
  0x1e   :  { %v121_v5 = vsel %vm68_vm0, 1.0, %v201_v4  ;;  %v122_v6 = vsel %vm69_vm1, 1.0, %v201_v4  ;;  %s171_s21 = scalar_lea.vmem %s108_s1, 16  ;;  %s175_s22 = scalar_lea.vmem %s108_s1, 32 }
  0x1f   :  { %vm76_vm2 = vcmp.eq.f32.partialorder %v121_v5, %v74_v2  ;;  %vm77_vm3 = vcmp.eq.f32.partialorder %v122_v6, %v75_v3  ;;  %p172_p10 = scmp.ne.s32.totalorder %s108_s1, %s171_s21  ;;  %p176_p11 = scmp.lt.s32.totalorder %s108_s1, %s108_s1 }
  0x20   :  { %v123_v7 = vsel %vm76_vm2, 1.0, %v201_v4  ;;  %v124_v8 = vsel %vm77_vm3, 1.0, %v201_v4  ;;  %p177_p12 = scmp.lt.s32.totalorder %s175_s22, %s171_s21 }
  0x21   :  { %v93_v9 = vadd.f32 %v124_v8, %v123_v7 }
  0x22   :  { %p178_p13 = por %p177_p12, %p176_p11 }
  0x23   :  { %v94_v10 = vrot.slane %v93_v9, 4 }
  0x24   :  { %p179_p0 = pnand %p178_p13, %p172_p10 }
  0x25   :  { %v95_v11 = vadd.f32 %v94_v10, %v93_v9 }
  0x27   :  { %v96_v12 = vrot.slane %v95_v11, 2 }
  0x29   :  { %v97_v13 = vadd.f32 %v96_v12, %v95_v11 }
  0x2b   :  { %v98_v14 = vrot.slane %v97_v13, 1 }
  0x2d   :  { %v99_v15 = vadd.f32 %v98_v14, %v97_v13 }
  0x2f   :  { %100 = vst [vmem:[#allocation8] sm:$0x1] %v99_v15 }
  0x30   :  { %182 = shalt.err (!%p179_p0)
}
  0x31   :  { %110 = dma.vmem_to_hbm [thread:$0]  %s108_s1, 16, %s229_s2, [#allocation5]  }
  0x32   :  { %195 = dma.done.wait [#allocation5], 16  }
  0x33   :  { %196 = vsyncadd [#allocation5], 4294967280 }
  0x34   :  { %114 = vsyncpa [#allocation4], 1 }
  0x35   :  { %115 = vsyncpa [#allocation7], 1 }
  0x36   :  { %116 = vsyncpa [#allocation5], 1 }

</bundles_post_ra>
